<compile_context>
chip_gen: v6e
topology: v6e:2x2x1
jax: 0.10.0
libtpu: 0.0.40
codegen_flags: <defaults>
</compile_context>

<pallas_src>
import jax
import jax.numpy as jnp
from jax.experimental import pallas as pl
from jax.experimental.pallas import tpu as pltpu


def _round_up(x, m):
    return (x + m - 1) // m * m


def clip_matmul_kernel(x_ref, w_ref, b_ref, o_ref, acc_ref):
    """o = clip(x, -1, 1) @ w + b   (normalization pre-folded into w/b)."""
    k = pl.program_id(2)

    @pl.when(k == 0)
    def _init():
        # Start the accumulator at the bias (sublane-broadcast of the (1, tn)
        # bias row) instead of zeros -> finalize is just a cast + store.
        acc_ref[...] = jnp.broadcast_to(b_ref[...], acc_ref.shape)

    x = jnp.clip(x_ref[...], -1.0, 1.0)
    acc_ref[...] += jnp.dot(x, w_ref[...], preferred_element_type=jnp.float32)

    @pl.when(k == pl.num_programs(2) - 1)
    def _finalize():
        o_ref[...] = acc_ref[...].astype(o_ref.dtype)


def normalizer_forward(x_nchw, mu, sigma, w, b, *,
                       tm=512, tn=256, tk=256, use_bf16_mxu=False):
    """x_nchw: (N, C, H, W); mu/sigma: (C,); w: (C*H*W, K); b: (K,)."""
    N, C, H, W = x_nchw.shape
    D = C * H * W
    K = w.shape[1]
    out_dtype = x_nchw.dtype

    # ---- Fold (clip(x)+1)/2 and (x - mu)/sigma into the classifier ---------
    # y = (((clip(x)+1)/2 - mu)/sigma) @ w + b
    #   = clip(x) @ (w * (0.5/sigma)_d[:, None]) + (b + ((0.5 - mu)/sigma)_d @ w)
    inv_sigma = 1.0 / sigma.reshape(C).astype(jnp.float32)
    scale_vec = jnp.repeat(0.5 * inv_sigma, H * W)                        # (D,)
    shift_vec = jnp.repeat(
        (0.5 - mu.reshape(C).astype(jnp.float32)) * inv_sigma, H * W)     # (D,)
    w_f32 = w.astype(jnp.float32)
    w_folded = w_f32 * scale_vec[:, None]                                 # (D, K)
    b_folded = b.astype(jnp.float32) + shift_vec @ w_f32                  # (K,)

    # ---- Tile sizes: sublane-aligned N, lane-dense K, 256-aligned D --------
    tm = min(tm, _round_up(N, 8))
    tn = min(tn, _round_up(K, 128))
    tk = min(tk, _round_up(D, 256))
    Np, Kp, Dp = _round_up(N, tm), _round_up(K, tn), _round_up(D, tk)

    compute_dtype = jnp.bfloat16 if use_bf16_mxu else jnp.float32
    x2 = jnp.pad(x_nchw.reshape(N, D),
                 ((0, Np - N), (0, Dp - D))).astype(compute_dtype)
    w_p = jnp.pad(w_folded, ((0, Dp - D), (0, Kp - K))).astype(compute_dtype)
    b_p = jnp.pad(b_folded.reshape(1, K), ((0, 0), (0, Kp - K)))          # f32

    grid = (Np // tm, Kp // tn, Dp // tk)

    # Double-buffered x/w/b/out tiles + resident f32 accumulator, 2x headroom,
    # capped well under v7x's 64 MiB physical VMEM.
    itemsize = jnp.dtype(compute_dtype).itemsize
    vmem_bytes = (2 * (tm * tk + tk * tn) * itemsize
                  + 2 * (tn + tm * tn) * 4 + tm * tn * 4)
    vmem_limit = int(min(max(2 * vmem_bytes, 8 << 20), 48 << 20))

    flops = 2 * Np * Kp * Dp
    bytes_accessed = (Np * Dp + Dp * Kp) * itemsize + Kp * 4 + Np * Kp * jnp.dtype(out_dtype).itemsize

    out_p = pl.pallas_call(
        clip_matmul_kernel,
        out_shape=jax.ShapeDtypeStruct((Np, Kp), out_dtype),
        grid_spec=pltpu.PrefetchScalarGridSpec(
            num_scalar_prefetch=0,
            grid=grid,
            in_specs=[
                pl.BlockSpec((tm, tk), lambda i, j, k: (i, k)),   # x tile
                pl.BlockSpec((tk, tn), lambda i, j, k: (k, j)),   # w tile
                pl.BlockSpec((1, tn), lambda i, j, k: (0, j)),    # bias row
            ],
            out_specs=pl.BlockSpec((tm, tn), lambda i, j, k: (i, j)),
            scratch_shapes=[pltpu.VMEM((tm, tn), jnp.float32)],
        ),
        compiler_params=pltpu.CompilerParams(
            dimension_semantics=("parallel", "parallel", "arbitrary"),
            vmem_limit_bytes=vmem_limit,
        ),
        cost_estimate=pl.CostEstimate(
            flops=flops, transcendentals=0, bytes_accessed=bytes_accessed),
    )(x2, w_p, b_p)

    return out_p[:N, :K]


def reference_forward(x_nchw, mu, sigma, w, b):
    """Pure-JAX reference mirroring the PyTorch module."""
    x = (jnp.clip(x_nchw, -1.0, 1.0) + 1.0) / 2.0
    x = (x - mu.reshape(1, -1, 1, 1)) / sigma.reshape(1, -1, 1, 1)
    N = x.shape[0]
    return x.reshape(N, -1) @ w + b.reshape(1, -1)


if __name__ == "__main__":
    # Small shapes consistent with the module (mu/sigma imply 3 channels).
    N, C, H, W = 2, 3, 16, 16
    K = 10  # classes for the synthetic linear classifier head

    key = jax.random.PRNGKey(0)
    kx, kw = jax.random.split(key)

    x = jax.random.normal(kx, (N, C, H, W), dtype=jnp.float32) * 1.5  # exercises clamp
    mu = jnp.array([0.485, 0.456, 0.406], dtype=jnp.float32)
    sigma = jnp.array([0.229, 0.224, 0.225], dtype=jnp.float32)

    # Deterministic synthetic classifier parameters (flatten + linear).
    # TODO(synk): the original `classifier` is an arbitrary nn.Module; only a
    # flatten+linear head is fused here.
    w = jax.random.normal(kw, (C * H * W, K), dtype=jnp.float32) * 0.02
    b = jnp.linspace(-0.1, 0.1, K, dtype=jnp.float32)

    out = normalizer_forward(x, mu, sigma, w, b)
    out = jax.block_until_ready(out)

    ref = reference_forward(x, mu, sigma, w, b)
    if not jnp.allclose(out, ref, atol=1e-4, rtol=1e-4):
        raise AssertionError("Pallas kernel does not match reference")

    print("KERNEL_OK")
</pallas_src>

<mosaic_0001>
module attributes {stable_mosaic.version = 11 : i64} {
  func.func @clip_matmul_kernel(%arg0: i32, %arg1: i32, %arg2: i32, %arg3: memref<8x256xf32, #tpu.memory_space<vmem>>, %arg4: memref<256x128xf32, #tpu.memory_space<vmem>>, %arg5: memref<1x128xf32, #tpu.memory_space<vmem>>, %arg6: memref<8x128xf32, #tpu.memory_space<vmem>>, %arg7: memref<8x128xf32, #tpu.memory_space<vmem>>) attributes {dimension_semantics = [#tpu.dimension_semantics<parallel>, #tpu.dimension_semantics<parallel>, #tpu.dimension_semantics<arbitrary>], iteration_bounds = array<i64: 1, 1, 3>, scalar_prefetch = 0 : i64, scratch_operands = 1 : i64, tpu.core_type = #tpu.core_type<tc>, window_params = [{transform_indices = @transform_0, window_bounds = array<i64: 8, 256>}, {transform_indices = @transform_1, window_bounds = array<i64: 256, 128>}, {transform_indices = @transform_2, window_bounds = array<i64: 1, 128>}, {transform_indices = @transform_3, window_bounds = array<i64: 8, 128>}]} {
    %c0_i32 = arith.constant 0 : i32
    %0 = arith.cmpi eq, %arg2, %c0_i32 : i32
    %1 = arith.extui %0 : i1 to i32
    %c0_i32_0 = arith.constant 0 : i32
    %2 = arith.cmpi ne, %1, %c0_i32_0 : i32
    scf.if %2 {
      %c0_11 = arith.constant 0 : index
      %c0_12 = arith.constant 0 : index
      %16 = vector.load %arg5[%c0_11, %c0_12] : memref<1x128xf32, #tpu.memory_space<vmem>>, vector<1x128xf32>
      %17 = vector.shape_cast %16 : vector<1x128xf32> to vector<1x128xf32>
      %18 = vector.broadcast %17 : vector<1x128xf32> to vector<8x128xf32>
      %c0_13 = arith.constant 0 : index
      %c0_14 = arith.constant 0 : index
      %19 = vector.load %arg7[%c0_13, %c0_14] : memref<8x128xf32, #tpu.memory_space<vmem>>, vector<8x128xf32>
      tpu.vector_store %arg7[%c0_13, %c0_14], %18 {strides = array<i32>} : memref<8x128xf32, #tpu.memory_space<vmem>>, vector<8x128xf32>,
    } else {
    }
    %c0 = arith.constant 0 : index
    %c0_1 = arith.constant 0 : index
    %3 = vector.load %arg3[%c0, %c0_1] : memref<8x256xf32, #tpu.memory_space<vmem>>, vector<8x256xf32>
    %cst = arith.constant -1.000000e+00 : f32
    %cst_2 = arith.constant 1.000000e+00 : f32
    %4 = vector.broadcast %cst : f32 to vector<8x256xf32>
    %5 = arith.maximumf %4, %3 : vector<8x256xf32>
    %6 = vector.broadcast %cst_2 : f32 to vector<8x256xf32>
    %7 = arith.minimumf %6, %5 : vector<8x256xf32>
    %c0_3 = arith.constant 0 : index
    %c0_4 = arith.constant 0 : index
    %8 = vector.load %arg7[%c0_3, %c0_4] : memref<8x128xf32, #tpu.memory_space<vmem>>, vector<8x128xf32>
    %c0_5 = arith.constant 0 : index
    %c0_6 = arith.constant 0 : index
    %9 = vector.load %arg4[%c0_5, %c0_6] : memref<256x128xf32, #tpu.memory_space<vmem>>, vector<256x128xf32>
    %cst_7 = arith.constant dense<0.000000e+00> : vector<8x128xf32>
    %10 = tpu.matmul %7, %9, %cst_7 {dimension_numbers = #tpu.dot_dimension_numbers<[1], [0], [0], [1], [0, 0, 1, 1], [], []>} : vector<8x256xf32>, vector<256x128xf32>, vector<8x128xf32> -> vector<8x128xf32>
    %11 = arith.addf %8, %10 : vector<8x128xf32>
    %c0_8 = arith.constant 0 : index
    %c0_9 = arith.constant 0 : index
    %12 = vector.load %arg7[%c0_8, %c0_9] : memref<8x128xf32, #tpu.memory_space<vmem>>, vector<8x128xf32>
    tpu.vector_store %arg7[%c0_8, %c0_9], %11 {strides = array<i32>} : memref<8x128xf32, #tpu.memory_space<vmem>>, vector<8x128xf32>,
    %c2_i32 = arith.constant 2 : i32
    %13 = arith.cmpi eq, %arg2, %c2_i32 : i32
    %14 = arith.extui %13 : i1 to i32
    %c0_i32_10 = arith.constant 0 : i32
    %15 = arith.cmpi ne, %14, %c0_i32_10 : i32
    scf.if %15 {
      %c0_11 = arith.constant 0 : index
      %c0_12 = arith.constant 0 : index
      %16 = vector.load %arg7[%c0_11, %c0_12] : memref<8x128xf32, #tpu.memory_space<vmem>>, vector<8x128xf32>
      %c0_13 = arith.constant 0 : index
      %c0_14 = arith.constant 0 : index
      %17 = vector.load %arg6[%c0_13, %c0_14] : memref<8x128xf32, #tpu.memory_space<vmem>>, vector<8x128xf32>
      tpu.vector_store %arg6[%c0_13, %c0_14], %16 {strides = array<i32>} : memref<8x128xf32, #tpu.memory_space<vmem>>, vector<8x128xf32>,
    } else {
    }
    return
  }
  func.func @transform_0(%arg0: i32, %arg1: i32, %arg2: i32) -> (i32, i32) {
    %c0_i32 = arith.constant 0 : i32
    return %arg0, %arg2 : i32, i32
  }
  func.func @transform_1(%arg0: i32, %arg1: i32, %arg2: i32) -> (i32, i32) {
    %c0_i32 = arith.constant 0 : i32
    return %arg2, %arg1 : i32, i32
  }
  func.func @transform_2(%arg0: i32, %arg1: i32, %arg2: i32) -> (i32, i32) {
    %c0_i32 = arith.constant 0 : i32
    %c0_i32_0 = arith.constant 0 : i32
    return %c0_i32, %arg1 : i32, i32
  }
  func.func @transform_3(%arg0: i32, %arg1: i32, %arg2: i32) -> (i32, i32) {
    %c0_i32 = arith.constant 0 : i32
    return %arg0, %arg1 : i32, i32
  }
}

</mosaic_0001>

<bundles_post_ra>
// kernel: tpu_custom_call.1
= control target key start
LH: loop header
LB: loop body
LE: loop exit
PB: predicated region body
PF: predicated region fallthrough
CT: control target
= control target key end

     0   :  { %8 = vsyncpa [#allocation4], 0  ;;  %s986_s0 = inlined_call_operand.hbm [shape: f32[8,768], index: 0, kind: input, shape index: {}]   ;;  %s987_s1 = inlined_call_operand.hbm [shape: f32[768,128], index: 1, kind: input, shape index: {}]   ;;  %s988_s2 = inlined_call_operand.vmem [shape: f32[1,128], index: 2, kind: input, shape index: {}]   ;;  %s989_s3 = inlined_call_operand.hbm [shape: f32[8,128], index: 3, kind: output, shape index: {}]  }
   0x1   :  { %10 = vsyncpa [#allocation4 + $0x1], 0 }
   0x2   :  { %11 = vsyncpa [#allocation7], 0 }
   0x3   :  { %13 = vsyncpa [#allocation7 + $0x1], 0 }
   0x4   :  { %14 = vsyncpa [#allocation5], 0  ;;  %s801_s12 = smov 0   ;;  %s803_s13 = smov 0  }
   0x5   :  { %s805_s14 = smov 0   ;;  %s807_s15 = smov 0  }
   0x6   :  { %s809_s16 = smov 0   ;;  %s811_s17 = smov 0  }
   0x7 LB: > { %s508_s18 = sadd.s32 4294967295, %s774_s17   ;;  %s32_s19 = sadd.s32 1, %s770_s16  ;;  %s774_s17 = sphi %s811_s17, %s20_s17   ;;  %s770_s16 = sphi %s809_s16, %s999_s16   ;;  %s766_s15 = sphi %s807_s15, %s998_s15   ;;  %s762_s14 = sphi %s805_s14, %s997_s14   ;;  %s758_s13 = sphi %s803_s13, %s996_s13   ;;  %s754_s12 = sphi %s801_s12, %s995_s12  }
   0x8   : > { %p33_p0 = scmp.ge.s32.totalorder %s32_s19, 3  ;;  %s48_s20 = sadd.s32 1, %s762_s14 }
   0x9   : > { %p55_p1 = scmp.ne.s32.totalorder %s762_s14, %s758_s13  ;;  %p56_p2 = scmp.eq.s32.totalorder %s774_s17, 0 }
   0xa   : > { %s1001_s19 = smov (%p33_p0, %s32_s19), 0  ;;  %p61_p4 = scmp.ne.s32.totalorder %s758_s13, %s754_s12 }
   0xb   : > { %p837_p3 = por %p56_p2, %p55_p1  ;;  %s44_s22 = ssub.s32 %s770_s16, %s1001_s19 }
   0xc   : > { %p62_p5 = scmp.eq.s32.totalorder %s508_s18, 0  ;;  %p46_p6 = scmp.eq.s32.totalorder %s44_s22, 0 }
   0xd   : > { %p582_p8 = scmp.lt.s32.totalorder %s774_s17, 3  ;;  %s855_s25 = sand.u32 1, %s762_s14  }
   0xe   : > { %p846_p7 = por %p62_p5, %p61_p4  ;;  %s530_s26 = sshll.u32 %s770_s16, 8 }
   0xf   : > { %s852_s24 = scalar_select %p46_p6, %s762_s14, %s48_s20  }
  0x10   : > { %s512_s27 = sshll.u32 %s855_s25, 4  ;;  %s185_s30 = scalar_lea.hbm %s986_s0, %s530_s26 }
  0x11   : > { %s177_s4 = scalar_lea.vmem [#allocation3], %s512_s27  ;;  %p864_p9 = pnand %p582_p8, %p837_p3 }
  0x12   : > { %s187_s5 = sshll.u32 %s177_s4, 4  ;;  %p518_p10 = scmp.ge.s32.totalorder %s774_s17, 1  ;;  %s188_s5 = int_to_ptr.vmem [resolvable:$true] %s187_s5 }
  0x13   : > { %p214_p11 = scmp.lt.s32.totalorder %s774_s17, 4  ;;  %s174_s7 = scalar_lea.sflag [#allocation4], %s855_s25 }
  0x14   : > { %p638_p12 = pneg %p864_p9  ;;  %s649_s8 = scalar_lea.vmem %s188_s5, 256 }
  0x15   : > { %p650_p13 = scmp.ne.s32.totalorder %s188_s5, %s649_s8  ;;  %s776_s9 = smov [#allocation3]  }
  0x16   : > { %s654_s10 = sshll.u32 %s776_s9, 4  ;;  %s655_s10 = int_to_ptr.vmem [resolvable:$false] %s654_s10 }
  0x17   : > { %p652_p0 = pnand %p650_p13, %p638_p12  ;;  %s656_s11 = scalar_lea.vmem %s655_s10, 512 }
  0x18   : > { %p657_p2 = scmp.lt.s32.totalorder %s188_s5, %s655_s10  ;;  %p658_p3 = scmp.lt.s32.totalorder %s656_s11, %s649_s8 }
  0x19   : > { %p653_p1 = pneg %p652_p0 }
  0x1a   : > { %p659_p4 = por %p658_p3, %p657_p2 }
  0x1c   : > { %p660_p5 = pnand %p659_p4, %p653_p1 }
  0x1e   : > { %663 = shalt.err (!%p660_p5)
}
  0x1f   : > { %578 = dma.hbm_to_vmem [thread:$0]  (!%p864_p9), %s185_s30, 256, %s188_s5, %s174_s7  }
  0x20   : > { %p882_p6 = pnand %p518_p10, %p214_p11  ;;  %s515_s20 = sshll.u32 %s855_s25, 8 }
  0x21   : > { %s531_s21 = sshll.u32 %s770_s16, 12  ;;  %s198_s28 = scalar_lea.vmem [#allocation6], %s515_s20 }
  0x22   : > { %s205_s27 = scalar_lea.hbm %s987_s1, %s531_s21  ;;  %s206_s29 = sshll.u32 %s198_s28, 4  ;;  %s207_s29 = int_to_ptr.vmem [resolvable:$true] %s206_s29 }
  0x23   : > { %s195_s4 = scalar_lea.sflag [#allocation7], %s855_s25  ;;  %s677_s8 = scalar_lea.vmem %s207_s29, 4096 }
  0x24   : > { %p678_p8 = scmp.ne.s32.totalorder %s207_s29, %s677_s8  ;;  %s777_s30 = smov [#allocation6]  }
  0x25   : > { %s682_s5 = sshll.u32 %s777_s30, 4  ;;  %s683_s5 = int_to_ptr.vmem [resolvable:$false] %s682_s5 }
  0x26   : > { %p680_p13 = pnand %p678_p8, %p638_p12  ;;  %s684_s7 = scalar_lea.vmem %s683_s5, 8192 }
  0x27   : > { %p685_p10 = scmp.lt.s32.totalorder %s207_s29, %s683_s5  ;;  %p686_p11 = scmp.lt.s32.totalorder %s684_s7, %s677_s8 }
  0x28   : > { %p681_p0 = pneg %p680_p13 }
  0x29   : > { %p687_p1 = por %p686_p11, %p685_p10 }
  0x2b   : > { %p688_p2 = pnand %p687_p1, %p681_p0 }
  0x2d   : > { %691 = shalt.err (!%p688_p2)
}
  0x2e   : > { %s778_s9 = smov 128   ;;  %s779_s10 = smov 8  }
  0x2f   : > { %581 = dma.hbm_to_vmem [thread:$0]  (!%p864_p9), %s205_s27, 4096, %s207_s29, %s195_s4, %s778_s9, %s778_s9, %s779_s10  }
  0x30   : > { %218 = sbr.rel (%p882_p6) target bundleno = 322 (0x142), region = 32  ;;  %s220_s25 = sand.u32 (!%p882_p6), 1, %s758_s13  }
  0x31   : > { %s519_s11 = sshll.u32 (!%p882_p6), %s220_s25, 4  ;;  %s221_s20 = scalar_lea.sflag (!%p882_p6), [#allocation4], %s220_s25 }
  0x32   : > { %s900_s21 = scalar_lea.vmem (!%p882_p6), [#allocation3], %s519_s11 }
  0x35   : > { %741 = dma.done.wait (%p846_p7), %s221_s20, 256  }
  0x36   : > { %743 = vsyncadd (%p846_p7), %s221_s20, 4294967040  ;;  %s520_s22 = sshll.u32 %s220_s25, 8  ;;  %s230_s26 = scalar_lea.sflag [#allocation7], %s220_s25 }
  0x37   : > { %s906_s6 = scalar_lea.vmem [#allocation6], %s520_s22 }
  0x38   : > { %745 = dma.done.wait (%p846_p7), %s230_s26, 4096  }
  0x39   : > { %747 = vsyncadd (%p846_p7), %s230_s26, 4294963200  ;;  %p521_p9 = scmp.ne.s32.totalorder %s766_s15, 0 }
  0x3b   : > { %267 = sbr.rel (%p521_p9) target bundleno = 66 (0x42), region = 44 }
  0x40   : > { %v522_v0 = vld [vmem:[%s988_s2] ss:$0 sm:$0xff] }
  0x41   : > { %275 = vst [vmem:[#allocation2] sm:$0xff] %v522_v0 }
  0x42 PF: > { %v314_v1 = vld [vmem:[%s906_s6 + $0xf8] sm:$0xff]  ;;  %v313_v3 = vld [vmem:[%s906_s6 + $0xf0] sm:$0xff]  ;;  %v312_v5 = vld [vmem:[%s906_s6 + $0xe8] sm:$0xff]  ;;  %p525_p7 = scmp.ne.s32.totalorder %s766_s15, 2 }
  0x43   : > { %v298_v2 = vld [vmem:[%s906_s6 + $0x78] sm:$0xff]  ;;  %532 = vmatprep.subr.mxu0 %v314_v1  ;;  %v297_v4 = vld [vmem:[%s906_s6 + $0x70] sm:$0xff]  ;;  %v296_v6 = vld [vmem:[%s906_s6 + $0x68] sm:$0xff] }
  0x44   : > { %533 = vmatpush3.msra.mxu0 %v298_v2  ;;  %v311_v7 = vld [vmem:[%s906_s6 + $0xe0] sm:$0xff]  ;;  %v310_v9 = vld [vmem:[%s906_s6 + $0xd8] sm:$0xff]  ;;  %v309_v11 = vld [vmem:[%s906_s6 + $0xd0] sm:$0xff] }
  0x45   : > { %534 = vmatprep.subr.mxu0 %v313_v3  ;;  %v295_v8 = vld [vmem:[%s906_s6 + $0x60] sm:$0xff]  ;;  %v294_v10 = vld [vmem:[%s906_s6 + $0x58] sm:$0xff]  ;;  %v293_v12 = vld [vmem:[%s906_s6 + $0x50] sm:$0xff] }
  0x46   : > { %535 = vmatpush3.msra.mxu0 %v297_v4  ;;  %v308_v13 = vld [vmem:[%s906_s6 + $0xc8] sm:$0xff]  ;;  %v307_v17 = vld [vmem:[%s906_s6 + $0xc0] sm:$0xff]  ;;  %v306_v19 = vld [vmem:[%s906_s6 + $0xb8] sm:$0xff] }
  0x47   : > { %536 = vmatprep.subr.mxu0 %v312_v5  ;;  %v277_v14 = vld [vmem:[%s900_s21 + $0x8] sm:$0xff]  ;;  %v291_v18 = vld [vmem:[%s906_s6 + $0x40] sm:$0xff]  ;;  %v305_v21 = vld [vmem:[%s906_s6 + $0xb0] sm:$0xff] }
  0x48   : > { %537 = vmatpush3.msra.mxu0 %v296_v6  ;;  %v292_v15 = vld [vmem:[%s906_s6 + $0x48] sm:$0xff]  ;;  %v524_v16 = vclamps-f32 %v277_v14, 1.0  ;;  %v290_v20 = vld [vmem:[%s906_s6 + $0x38] sm:$0xff]  ;;  %v289_v22 = vld [vmem:[%s906_s6 + $0x30] sm:$0xff] }
  0x49   : > { %538 = vmatprep.subr.mxu0 %v311_v7  ;;  %v304_v23 = vld [vmem:[%s906_s6 + $0xa8] sm:$0xff]  ;;  %v303_v25 = vld [vmem:[%s906_s6 + $0xa0] sm:$0xff]  ;;  %v302_v27 = vld [vmem:[%s906_s6 + $0x98] sm:$0xff] }
  0x4a   : > { %539 = vmatpush3.msra.mxu0 %v295_v8  ;;  %379 = vmatprep.mubr.f32.mxu0 %v524_v16  ;;  %v288_v24 = vld [vmem:[%s906_s6 + $0x28] sm:$0xff]  ;;  %v287_v26 = vld [vmem:[%s906_s6 + $0x20] sm:$0xff]  ;;  %v286_v28 = vld [vmem:[%s906_s6 + $0x18] sm:$0xff] }
  0x4b   : > { %540 = vmatprep.subr.mxu0 %v310_v9  ;;  %v301_v29 = vld [vmem:[%s906_s6 + $0x90] sm:$0xff]  ;;  %v300_v31 = vld [vmem:[%s906_s6 + $0x88] sm:$0xff]  ;;  %v299_v34 = vld [vmem:[%s906_s6 + $0x80] sm:$0xff] }
  0x4c   : > { %541 = vmatpush3.msra.mxu0 %v294_v10  ;;  %v285_v30 = vld [vmem:[%s906_s6 + $0x10] sm:$0xff]  ;;  %v284_v33 = vld [vmem:[%s906_s6 + $0x8] sm:$0xff]  ;;  %v283_v35 = vld [vmem:[%s906_s6] sm:$0xff] }
  0x4d   : > { %542 = vmatprep.subr.mxu0 %v309_v11  ;;  %v276_v32 = vld [vmem:[%s900_s21] sm:$0xff]  ;;  %v282_v38 = vld [vmem:[#allocation2] sm:$0xff] }
  0x4e   : > { %543 = vmatpush3.msra.mxu0 %v293_v12  ;;  %v523_v36 = vclamps-f32 %v276_v32, 1.0 }
  0x4f   : > { %544 = vmatprep.subr.mxu0 %v308_v13 }
  0x50   : > { %545 = vmatpush3.msra.mxu0 %v292_v15 }
  0x51   : > { %546 = vmatprep.subr.mxu0 %v307_v17 }
  0x52   : > { %547 = vmatpush3.msra.mxu0 %v291_v18 }
  0x53   : > { %548 = vmatprep.subr.mxu0 %v306_v19 }
  0x54   : > { %549 = vmatpush3.msra.mxu0 %v290_v20 }
  0x55   : > { %550 = vmatprep.subr.mxu0 %v305_v21 }
  0x56   : > { %551 = vmatpush3.msra.mxu0 %v289_v22 }
  0x57   : > { %552 = vmatprep.subr.mxu0 %v304_v23 }
  0x58   : > { %553 = vmatpush3.msra.mxu0 %v288_v24 }
  0x59   : > { %554 = vmatprep.subr.mxu0 %v303_v25 }
  0x5a   : > { %555 = vmatpush3.msra.mxu0 %v287_v26 }
  0x5b   : > { %556 = vmatprep.subr.mxu0 %v302_v27 }
  0x5c   : > { %557 = vmatpush3.msra.mxu0 %v286_v28 }
  0x5d   : > { %558 = vmatprep.subr.mxu0 %v301_v29 }
  0x5e   : > { %559 = vmatpush3.msra.mxu0 %v285_v30 }
  0x5f   : > { %560 = vmatprep.subr.mxu0 %v300_v31 }
  0x60   : > { %561 = vmatpush3.msra.mxu0 %v284_v33 }
  0x61   : > { %562 = vmatprep.subr.mxu0 %v299_v34 }
  0x62   : > { %563 = vmatpush3.msra.mxu0 %v283_v35 }
  0x63   : > { %380 = vmatmul.mubr.f32.vlgmr.msra.gmra.mxu0 %v523_v36 }
 0x123   : > { %v564_v37 = vpop.f32.mrf.mxu0 }
 0x125   : > { %v565_v39 = vpop.f32.mrf.mxu0 }
 0x126   : > { %v566_v40 = vadd.f32 %v565_v39, %v564_v37  ;;  %390 = sbr.rel (%p525_p7) target bundleno = 307 (0x133), region = 48 }
 0x128   : > { %v385_v41 = vadd.f32 %v566_v40, %v282_v38 }
 0x12a   : > { %386 = vst [vmem:[#allocation2] sm:$0xff] %v385_v41 }
 0x131   : > { %v391_v42 = vld [vmem:[#allocation2] sm:$0xff] }
 0x132   : > { %392 = vst [vmem:[#allocation8] sm:$0xff] %v391_v42 }
 0x133 PF: > { %p953_p12 = scmp.eq.s32.totalorder %s508_s18, 2  ;;  %s780_s28 = smov [#allocation8]  }
 0x134   : > { %s403_s29 = sshll.u32 %s780_s28, 4  ;;  %s404_s29 = int_to_ptr.vmem [resolvable:$true] %s403_s29 }
 0x135   : > { %s692_s4 = scalar_lea.vmem %s404_s29, 128  ;;  %p699_p6 = scmp.lt.s32.totalorder %s404_s29, %s404_s29 }
 0x136   : > { %p693_p3 = scmp.ne.s32.totalorder %s404_s29, %s692_s4  ;;  %p700_p8 = scmp.lt.s32.totalorder %s692_s4, %s692_s4 }
 0x138   : > { %p694_p4 = pnand %p693_p3, %p953_p12  ;;  %p701_p13 = por %p700_p8, %p699_p6 }
 0x13a   : > { %p695_p5 = pneg %p694_p4 }
 0x13c   : > { %p702_p0 = pnand %p701_p13, %p695_p5 }
 0x13e   : > { %705 = shalt.err (!%p702_p0)
}
 0x13f   : > { %572 = dma.vmem_to_hbm [thread:$0]  (%p953_p12), %s404_s29, 128, %s989_s3, [#allocation5]  }
 0x140   : > { %749 = dma.done.wait (%p953_p12), [#allocation5], 128  }
 0x141   : > { %751 = vsyncadd (%p953_p12), [#allocation5], 4294967168 }
 0x142 PF: > { %s20_s17 = sadd.s32 1, %s774_s17   ;;  %s995_s12 = smov %s758_s13 }
 0x143   : > { %p17_p10 = scmp.ge.s32.totalorder %s20_s17, 5   ;;  %s996_s13 = smov %s762_s14 }
 0x144   : > { %s997_s14 = smov %s852_s24  ;;  %s998_s15 = smov %s770_s16 }
 0x145   : > { %s999_s16 = smov %s1001_s19  ;;  %19 = sbr.rel (!%p17_p10) target bundleno = 7 (0x7), region = 94 }
 0x14a   :  { %416 = vsyncpa [#allocation4], 1 }
 0x14b   :  { %418 = vsyncpa [#allocation4 + $0x1], 1 }
 0x14c   :  { %419 = vsyncpa [#allocation7], 1 }
 0x14d   :  { %421 = vsyncpa [#allocation7 + $0x1], 1 }
 0x14e   :  { %422 = vsyncpa [#allocation5], 1 }
 0x14f   :  { %424 = vsyncpa [#allocation5 + $0x1], 1 }

</bundles_post_ra>
